<compile_context>
chip_gen: v7x
topology: tpu7x:2x2x1
jax: 0.10.0
libtpu: 0.0.40
codegen_flags: <defaults>
</compile_context>

<pallas_src>
import functools

import jax
import jax.numpy as jnp
from jax.experimental import pallas as pl
from jax.experimental.pallas import tpu as pltpu

_VMEM_LIMIT = 32 * 1024 * 1024  # raise v5e's 16 MiB scoped default; safe on v6e/v7x


def _pick_tile(dim, target, align):
    """Largest tile <= target that divides `dim` and is `align`-aligned, else full dim."""
    if dim <= target:
        return dim
    t = (target // align) * align
    while t >= align:
        if dim % t == 0:
            return t
        t -= align
    return dim


def _init_linear(key, fan_in, fan_out):
    # torch Linear stores (out, in); we keep the transposed (in, out) layout so the
    # kernels contract x's last dim against w's first dim with no in-kernel transpose.
    return jax.random.normal(key, (fan_in, fan_out), jnp.float32) / jnp.sqrt(
        jnp.float32(fan_in))


# ------------------------------ linear kernels ------------------------------ #
def _linear_kernel(x_ref, w_ref, b_ref, o_ref, acc_ref):
    kk = pl.program_id(2)

    @pl.when(kk == 0)
    def _init():
        acc_ref[...] = jnp.zeros_like(acc_ref)

    acc_ref[...] += jnp.dot(x_ref[...], w_ref[...],
                            preferred_element_type=jnp.float32)

    @pl.when(kk == pl.num_programs(2) - 1)
    def _finalize():
        o_ref[...] = (acc_ref[...] + b_ref[...].astype(jnp.float32)).astype(o_ref.dtype)


def _linear_residual_kernel(x_ref, w_ref, b_ref, r_ref, o_ref, acc_ref):
    kk = pl.program_id(2)

    @pl.when(kk == 0)
    def _init():
        acc_ref[...] = jnp.zeros_like(acc_ref)

    acc_ref[...] += jnp.dot(x_ref[...], w_ref[...],
                            preferred_element_type=jnp.float32)

    @pl.when(kk == pl.num_programs(2) - 1)
    def _finalize():
        o_ref[...] = (acc_ref[...] + b_ref[...].astype(jnp.float32)
                      + r_ref[...].astype(jnp.float32)).astype(o_ref.dtype)


def pallas_linear(x, w, b=None, residual=None, *, tm=256, tn=256, tk=512):
    """y = x @ w (+ b) (+ residual); x: (M, K), w: (K, N) (= torch W.T)."""
    M, K = x.shape
    Kw, N = w.shape
    assert K == Kw
    tm = _pick_tile(M, tm, 8)
    tn = _pick_tile(N, tn, 128)
    tk = _pick_tile(K, tk, 128)
    if b is None:
        b = jnp.zeros((N,), x.dtype)
    grid = (M // tm, N // tn, K // tk)
    in_specs = [
        pl.BlockSpec((tm, tk), lambda i, j, k: (i, k)),
        pl.BlockSpec((tk, tn), lambda i, j, k: (k, j)),
        pl.BlockSpec((1, tn), lambda i, j, k: (0, j)),
    ]
    args = [x, w, b.reshape(1, N)]
    kernel = _linear_kernel
    if residual is not None:
        in_specs.append(pl.BlockSpec((tm, tn), lambda i, j, k: (i, j)))
        args.append(residual)
        kernel = _linear_residual_kernel
    itemsize = x.dtype.itemsize
    return pl.pallas_call(
        kernel,
        out_shape=jax.ShapeDtypeStruct((M, N), x.dtype),
        grid=grid,
        in_specs=in_specs,
        out_specs=pl.BlockSpec((tm, tn), lambda i, j, k: (i, j)),
        scratch_shapes=[pltpu.VMEM((tm, tn), jnp.float32)],
        compiler_params=pltpu.CompilerParams(
            dimension_semantics=("parallel", "parallel", "arbitrary"),
            vmem_limit_bytes=_VMEM_LIMIT),
        cost_estimate=pl.CostEstimate(
            flops=2 * M * N * K,
            transcendentals=0,
            bytes_accessed=itemsize * (M * K + K * N + 2 * M * N)),
    )(*args)


# ------------------------------- GEGLU kernel ------------------------------- #
def _geglu_kernel(x_ref, wx_ref, wg_ref, bx_ref, bg_ref, o_ref, accx_ref, accg_ref):
    kk = pl.program_id(2)

    @pl.when(kk == 0)
    def _init():
        accx_ref[...] = jnp.zeros_like(accx_ref)
        accg_ref[...] = jnp.zeros_like(accg_ref)

    x = x_ref[...]
    accx_ref[...] += jnp.dot(x, wx_ref[...], preferred_element_type=jnp.float32)
    accg_ref[...] += jnp.dot(x, wg_ref[...], preferred_element_type=jnp.float32)

    @pl.when(kk == pl.num_programs(2) - 1)
    def _finalize():
        a = accx_ref[...] + bx_ref[...].astype(jnp.float32)
        g = accg_ref[...] + bg_ref[...].astype(jnp.float32)
        # TODO(synk): torch GEGLU uses exact (erf) GELU; tanh approximation here.
        o_ref[...] = (a * jax.nn.gelu(g)).astype(o_ref.dtype)


def pallas_geglu(x, w_x, w_g, b_x, b_g, *, tm=256, tn=256, tk=512):
    """GEGLU: (x@w_x+b_x) * gelu(x@w_g+b_g), gate fused with the projection."""
    M, K = x.shape
    N = w_x.shape[1]
    tm = _pick_tile(M, tm, 8)
    tn = _pick_tile(N, tn, 128)
    tk = _pick_tile(K, tk, 128)
    grid = (M // tm, N // tn, K // tk)
    itemsize = x.dtype.itemsize
    return pl.pallas_call(
        _geglu_kernel,
        out_shape=jax.ShapeDtypeStruct((M, N), x.dtype),
        grid=grid,
        in_specs=[
            pl.BlockSpec((tm, tk), lambda i, j, k: (i, k)),
            pl.BlockSpec((tk, tn), lambda i, j, k: (k, j)),
            pl.BlockSpec((tk, tn), lambda i, j, k: (k, j)),
            pl.BlockSpec((1, tn), lambda i, j, k: (0, j)),
            pl.BlockSpec((1, tn), lambda i, j, k: (0, j)),
        ],
        out_specs=pl.BlockSpec((tm, tn), lambda i, j, k: (i, j)),
        scratch_shapes=[pltpu.VMEM((tm, tn), jnp.float32),
                        pltpu.VMEM((tm, tn), jnp.float32)],
        compiler_params=pltpu.CompilerParams(
            dimension_semantics=("parallel", "parallel", "arbitrary"),
            vmem_limit_bytes=_VMEM_LIMIT),
        cost_estimate=pl.CostEstimate(
            flops=4 * M * N * K,
            transcendentals=M * N,
            bytes_accessed=itemsize * (M * K + 2 * K * N + M * N)),
    )(x, w_x, w_g, b_x.reshape(1, N), b_g.reshape(1, N))


# -------------------------- flash-attention kernel -------------------------- #
def _flash_attn_kernel(q_ref, k_ref, v_ref, o_ref, m_ref, l_ref, acc_ref, *,
                       heads, dim_head):
    kv_idx = pl.program_id(2)

    @pl.when(kv_idx == 0)
    def _init():
        m_ref[...] = jnp.full_like(m_ref, -jnp.inf)
        l_ref[...] = jnp.zeros_like(l_ref)
        acc_ref[...] = jnp.zeros_like(acc_ref)

    # fp32 similarity (matches torch's _ATTN_PRECISION == 'fp32' branch).
    q = q_ref[0].astype(jnp.float32)          # (tq, heads*dim_head); scale folded in W_q
    k = k_ref[0].astype(jnp.float32)          # (tk, heads*dim_head)
    v = v_ref[0].astype(jnp.float32)

    for h in range(heads):                    # static unroll over heads
        lo = h * dim_head
        qh = q[:, lo:lo + dim_head]
        kh = k[:, lo:lo + dim_head]
        vh = v[:, lo:lo + dim_head]
        # contract on the last dim of both operands: no transposed K copy.
        s = jax.lax.dot_general(qh, kh, (((1,), (1,)), ((), ())),
                                preferred_element_type=jnp.float32)      # (tq, tk)
        m_prev = m_ref[h]
        m_new = jnp.maximum(m_prev, jnp.max(s, axis=-1, keepdims=True))
        alpha = jnp.exp(m_prev - m_new)
        p = jnp.exp(s - m_new)
        l_ref[h] = alpha * l_ref[h] + jnp.sum(p, axis=-1, keepdims=True)
        acc_ref[h] = alpha * acc_ref[h] + jnp.dot(
            p, vh, preferred_element_type=jnp.float32)
        m_ref[h] = m_new

    @pl.when(kv_idx == pl.num_programs(2) - 1)
    def _finalize():
        # exact reciprocal keeps the fp32 reference match tight;
        # pl.reciprocal(..., approx=True) would move the divide to the idle EUP.
        outs = [acc_ref[h] * pl.reciprocal(l_ref[h], approx=False)
                for h in range(heads)]
        o_ref[0] = jnp.concatenate(outs, axis=-1).astype(o_ref.dtype)  # lane-dense store


def pallas_flash_attention(q, k, v, *, heads, dim_head, tq=256, tk=512):
    """q: (B, Nq, h*d); k/v: (B, Nkv, h*d) -> (B, Nq, h*d).
    Heads stay packed on the channel axis: no '(b h) n d' transposes in HBM."""
    B, N, Ci = q.shape
    Mc = k.shape[1]
    tq = _pick_tile(N, tq, 8)
    tk = _pick_tile(Mc, tk, 8)
    kernel = functools.partial(_flash_attn_kernel, heads=heads, dim_head=dim_head)
    itemsize = q.dtype.itemsize
    return pl.pallas_call(
        kernel,
        out_shape=jax.ShapeDtypeStruct((B, N, Ci), q.dtype),
        grid=(B, N // tq, Mc // tk),
        in_specs=[
            pl.BlockSpec((1, tq, Ci), lambda b, qi, ki: (b, qi, 0)),
            pl.BlockSpec((1, tk, Ci), lambda b, qi, ki: (b, ki, 0)),
            pl.BlockSpec((1, tk, Ci), lambda b, qi, ki: (b, ki, 0)),
        ],
        out_specs=pl.BlockSpec((1, tq, Ci), lambda b, qi, ki: (b, qi, 0)),
        scratch_shapes=[
            pltpu.VMEM((heads, tq, 1), jnp.float32),          # running max
            pltpu.VMEM((heads, tq, 1), jnp.float32),          # running sum
            pltpu.VMEM((heads, tq, dim_head), jnp.float32),   # output accumulator
        ],
        compiler_params=pltpu.CompilerParams(
            dimension_semantics=("parallel", "parallel", "arbitrary"),
            vmem_limit_bytes=_VMEM_LIMIT),
        cost_estimate=pl.CostEstimate(
            flops=4 * B * N * Mc * Ci,
            transcendentals=B * heads * N * Mc,
            bytes_accessed=itemsize * (2 * B * N * Ci + 2 * B * Mc * Ci)),
    )(q, k, v)


# ------------------------------- norm kernels ------------------------------- #
def _layernorm_kernel(x_ref, g_ref, b_ref, o_ref, *, eps):
    x = x_ref[...].astype(jnp.float32)
    mu = jnp.mean(x, axis=-1, keepdims=True)
    xc = x - mu
    var = jnp.mean(xc * xc, axis=-1, keepdims=True)
    y = xc * jax.lax.rsqrt(var + eps)
    y = y * g_ref[...].astype(jnp.float32) + b_ref[...].astype(jnp.float32)
    o_ref[...] = y.astype(o_ref.dtype)


def pallas_layernorm(x, gamma, beta, *, eps=1e-5, tm=512):
    shape = x.shape
    C = shape[-1]
    x2d = x.reshape(-1, C)
    M = x2d.shape[0]
    tm = _pick_tile(M, tm, 8)
    out = pl.pallas_call(
        functools.partial(_layernorm_kernel, eps=eps),
        out_shape=jax.ShapeDtypeStruct((M, C), x.dtype),
        grid=(M // tm,),
        in_specs=[
            pl.BlockSpec((tm, C), lambda i: (i, 0)),
            pl.BlockSpec((1, C), lambda i: (0, 0)),
            pl.BlockSpec((1, C), lambda i: (0, 0)),
        ],
        out_specs=pl.BlockSpec((tm, C), lambda i: (i, 0)),
        compiler_params=pltpu.CompilerParams(
            dimension_semantics=("parallel",),
            vmem_limit_bytes=_VMEM_LIMIT),
    )(x2d, gamma.reshape(1, C), beta.reshape(1, C))
    return out.reshape(shape)


def _groupnorm_kernel(x_ref, g_ref, b_ref, o_ref, *, groups, eps):
    x = x_ref[0].astype(jnp.float32)                 # (C, HW)
    C, HW = x.shape
    xg = x.reshape(groups, (C // groups) * HW)
    mu = jnp.mean(xg, axis=-1, keepdims=True)
    xc = xg - mu
    var = jnp.mean(xc * xc, axis=-1, keepdims=True)
    xn = (xc * jax.lax.rsqrt(var + eps)).reshape(C, HW)
    y = xn * g_ref[...].astype(jnp.float32) + b_ref[...].astype(jnp.float32)
    o_ref[0] = y.T.astype(o_ref.dtype)               # fused 'b c (h w) -> b (h w) c'


def pallas_groupnorm_to_tokens(x_nchw, gamma, beta, *, groups=32, eps=1e-6):
    """GroupNorm(32, C) fused with the NCHW -> (B, HW, C) token relayout."""
    B, C, H, W = x_nchw.shape
    HW = H * W
    x = x_nchw.reshape(B, C, HW)
    return pl.pallas_call(
        functools.partial(_groupnorm_kernel, groups=groups, eps=eps),
        out_shape=jax.ShapeDtypeStruct((B, HW, C), x.dtype),
        grid=(B,),
        in_specs=[
            pl.BlockSpec((1, C, HW), lambda b: (b, 0, 0)),
            pl.BlockSpec((C, 1), lambda b: (0, 0)),
            pl.BlockSpec((C, 1), lambda b: (0, 0)),
        ],
        out_specs=pl.BlockSpec((1, HW, C), lambda b: (b, 0, 0)),
        compiler_params=pltpu.CompilerParams(
            dimension_semantics=("parallel",),
            vmem_limit_bytes=_VMEM_LIMIT),
    )(x, gamma.reshape(C, 1), beta.reshape(C, 1))


# ------------------------------ module wrappers ------------------------------ #
class CrossAttentionPallas:
    """CrossAttention with fused q/k/v projection, flash attention, and fused
    output-projection + residual. dropout=0.0 => identity."""

    def __init__(self, query_dim, context_dim=None, heads=8, dim_head=64, key=None):
        inner = heads * dim_head
        ctx_dim = query_dim if context_dim is None else context_dim
        self.heads = heads
        self.dim_head = dim_head
        self.inner_dim = inner
        self.scale = dim_head ** (-0.5)
        k1, k2, k3, k4, k5 = jax.random.split(key, 5)
        self.w_q = _init_linear(k1, query_dim, inner)   # torch: bias=False
        self.w_k = _init_linear(k2, ctx_dim, inner)
        self.w_v = _init_linear(k3, ctx_dim, inner)
        self.w_o = _init_linear(k4, inner, query_dim)
        self.b_o = 0.01 * jax.random.normal(k5, (query_dim,), jnp.float32)
        # perf: fold the softmax scale into W_q and fuse projections so the
        # activations are streamed from HBM once.
        self.w_q_scaled = self.w_q * self.scale
        self.w_kv = jnp.concatenate([self.w_k, self.w_v], axis=1)
        self.w_qkv = (jnp.concatenate([self.w_q_scaled, self.w_k, self.w_v], axis=1)
                      if ctx_dim == query_dim else None)

    def __call__(self, x, context=None, residual=None):
        # TODO(synk): optional attention `mask` (masked_fill) path not implemented.
        B, N, _ = x.shape
        inner = self.inner_dim
        x2d = x.reshape(B * N, -1)
        if context is None and self.w_qkv is not None:
            qkv = pallas_linear(x2d, self.w_qkv)                   # (B*N, 3*inner)
            q = qkv[:, :inner].reshape(B, N, inner)
            k = qkv[:, inner:2 * inner].reshape(B, N, inner)
            v = qkv[:, 2 * inner:].reshape(B, N, inner)
        else:
            ctx = x if context is None else context
            Mc = ctx.shape[1]
            c2d = ctx.reshape(B * Mc, -1)
            q = pallas_linear(x2d, self.w_q_scaled).reshape(B, N, inner)
            kv = pallas_linear(c2d, self.w_kv)                     # (B*Mc, 2*inner)
            k = kv[:, :inner].reshape(B, Mc, inner)
            v = kv[:, inner:].reshape(B, Mc, inner)
        out = pallas_flash_attention(q, k, v, heads=self.heads, dim_head=self.dim_head)
        res2d = None if residual is None else residual.reshape(B * N, -1)
        out = pallas_linear(out.reshape(B * N, inner), self.w_o, self.b_o,
                            residual=res2d)
        return out.reshape(B, N, -1)


class FeedForwardPallas:
    """FeedForward with GEGLU (gated_ff=True); dropout=0.0 => identity."""

    def __init__(self, dim, mult=4, key=None):
        inner = dim * mult
        k1, k2, k3, k4, k5, k6 = jax.random.split(key, 6)
        self.w_x = _init_linear(k1, dim, inner)
        self.w_g = _init_linear(k2, dim, inner)
        self.b_x = 0.01 * jax.random.normal(k3, (inner,), jnp.float32)
        self.b_g = 0.01 * jax.random.normal(k4, (inner,), jnp.float32)
        self.w_o = _init_linear(k5, inner, dim)
        self.b_o = 0.01 * jax.random.normal(k6, (dim,), jnp.float32)

    def __call__(self, x, residual=None):
        B, N, D = x.shape
        x2d = x.reshape(B * N, D)
        h = pallas_geglu(x2d, self.w_x, self.w_g, self.b_x, self.b_g)
        r2d = None if residual is None else residual.reshape(B * N, D)
        out = pallas_linear(h, self.w_o, self.b_o, residual=r2d)
        return out.reshape(B, N, D)


class BasicTransformerBlockPallas:
    def __init__(self, dim, n_heads, d_head, context_dim=None, key=None):
        ka, kb, kf, kn = jax.random.split(key, 4)
        self.attn1 = CrossAttentionPallas(dim, None, n_heads, d_head, key=ka)
        self.attn2 = CrossAttentionPallas(dim, context_dim, n_heads, d_head, key=kb)
        self.ff = FeedForwardPallas(dim, key=kf)
        kg = jax.random.split(kn, 6)
        mk = lambda k: 1.0 + 0.05 * jax.random.normal(k, (dim,), jnp.float32)
        bk = lambda k: 0.05 * jax.random.normal(k, (dim,), jnp.float32)
        self.g1, self.b1 = mk(kg[0]), bk(kg[1])
        self.g2, self.b2 = mk(kg[2]), bk(kg[3])
        self.g3, self.b3 = mk(kg[4]), bk(kg[5])

    def __call__(self, x, context=None):
        h = pallas_layernorm(x, self.g1, self.b1)
        x = self.attn1(h, context=None, residual=x)   # self-attn (disable_self_attn=False)
        h = pallas_layernorm(x, self.g2, self.b2)
        x = self.attn2(h, context=context, residual=x)
        h = pallas_layernorm(x, self.g3, self.b3)
        x = self.ff(h, residual=x)
        return x


class SpatialTransformerPallas:
    """SpatialTransformer forward (use_linear=False: 1x1 convs == per-token linears)."""

    def __init__(self, in_channels, n_heads, d_head, depth=1, context_dim=None, key=None):
        assert in_channels % 32 == 0, "GroupNorm(32, C) requires C % 32 == 0"
        if key is None:
            key = jax.random.PRNGKey(0)
        inner = n_heads * d_head
        self.in_channels = in_channels
        self.inner_dim = inner
        if context_dim is not None and not isinstance(context_dim, (list, tuple)):
            context_dim = [context_dim] * depth
        if context_dim is None:
            context_dim = [None] * depth
        keys = jax.random.split(key, 6 + depth)
        self.gn_gamma = 1.0 + 0.05 * jax.random.normal(keys[0], (in_channels,), jnp.float32)
        self.gn_beta = 0.05 * jax.random.normal(keys[1], (in_channels,), jnp.float32)
        self.w_in = _init_linear(keys[2], in_channels, inner)     # proj_in (1x1 conv)
        self.b_in = 0.01 * jax.random.normal(keys[3], (inner,), jnp.float32)
        self.blocks = [
            BasicTransformerBlockPallas(inner, n_heads, d_head, context_dim[d],
                                        key=keys[6 + d])
            for d in range(depth)
        ]
        # NOTE: torch zero-initializes proj_out (zero_module); small random weights
        # are used here so the numerical check is non-trivial (forward math identical).
        self.w_out = _init_linear(keys[4], inner, in_channels)    # proj_out (1x1 conv)
        self.b_out = 0.01 * jax.random.normal(keys[5], (in_channels,), jnp.float32)

    def __call__(self, x, context=None):
        if not isinstance(context, (list, tuple)):
            context = [context] * len(self.blocks)
        B, C, H, W = x.shape
        HW = H * W
        x_in = x
        # GroupNorm fused with 'b c h w -> b (h w) c' (1x1 conv commutes with it).
        tok = pallas_groupnorm_to_tokens(x, self.gn_gamma, self.gn_beta,
                                         groups=32, eps=1e-6)      # (B, HW, C)
        h = pallas_linear(tok.reshape(B * HW, C), self.w_in, self.b_in)
        h = h.reshape(B, HW, self.inner_dim)
        for blk, ctx in zip(self.blocks, context):
            h = blk(h, ctx)
        out = pallas_linear(h.reshape(B * HW, self.inner_dim), self.w_out, self.b_out)
        out = out.reshape(B, HW, C)
        # 'b (h w) c -> b c h w' + residual (single XLA transpose + add).
        return out.transpose(0, 2, 1).reshape(B, C, H, W) + x_in


# ---------------------------------- reference --------------------------------- #
_HI = jax.lax.Precision.HIGHEST


def _ref_matmul(a, b):
    return jnp.matmul(a, b, precision=_HI)


def _ref_layernorm(x, g, b, eps=1e-5):
    mu = jnp.mean(x, axis=-1, keepdims=True)
    var = jnp.mean((x - mu) ** 2, axis=-1, keepdims=True)
    return (x - mu) / jnp.sqrt(var + eps) * g + b


def _ref_attention(attn, x, context=None):
    B, N, _ = x.shape
    ctx = x if context is None else context
    Mc = ctx.shape[1]
    h, d = attn.heads, attn.dim_head
    q = _ref_matmul(x, attn.w_q)
    k = _ref_matmul(ctx, attn.w_k)
    v = _ref_matmul(ctx, attn.w_v)
    q = q.reshape(B, N, h, d).transpose(0, 2, 1, 3)
    k = k.reshape(B, Mc, h, d).transpose(0, 2, 1, 3)
    v = v.reshape(B, Mc, h, d).transpose(0, 2, 1, 3)
    sim = jnp.einsum("bhid,bhjd->bhij", q, k, precision=_HI) * attn.scale
    p = jax.nn.softmax(sim, axis=-1)
    o = jnp.einsum("bhij,bhjd->bhid", p, v, precision=_HI)
    o = o.transpose(0, 2, 1, 3).reshape(B, N, h * d)
    return _ref_matmul(o, attn.w_o) + attn.b_o


def _ref_feedforward(ff, x):
    a = _ref_matmul(x, ff.w_x) + ff.b_x
    g = _ref_matmul(x, ff.w_g) + ff.b_g
    y = a * jax.nn.gelu(g)     # tanh approximation, matching the kernel
    return _ref_matmul(y, ff.w_o) + ff.b_o


def _ref_block(blk, x, context=None):
    x = _ref_attention(blk.attn1, _ref_layernorm(x, blk.g1, blk.b1), None) + x
    x = _ref_attention(blk.attn2, _ref_layernorm(x, blk.g2, blk.b2), context) + x
    x = _ref_feedforward(blk.ff, _ref_layernorm(x, blk.g3, blk.b3)) + x
    return x


def _reference(mod, x, context=None):
    B, C, H, W = x.shape
    if not isinstance(context, (list, tuple)):
        context = [context] * len(mod.blocks)
    xg = x.reshape(B, 32, (C // 32) * H * W)
    mu = jnp.mean(xg, axis=-1, keepdims=True)
    var = jnp.mean((xg - mu) ** 2, axis=-1, keepdims=True)
    xn = ((xg - mu) / jnp.sqrt(var + 1e-6)).reshape(B, C, H, W)
    xn = xn * mod.gn_gamma.reshape(1, C, 1, 1) + mod.gn_beta.reshape(1, C, 1, 1)
    t = xn.reshape(B, C, H * W).transpose(0, 2, 1)                 # (B, HW, C)
    h = _ref_matmul(t, mod.w_in) + mod.b_in
    for blk, ctx in zip(mod.blocks, context):
        h = _ref_block(blk, h, ctx)
    out = _ref_matmul(h, mod.w_out) + mod.b_out
    return out.transpose(0, 2, 1).reshape(B, C, H, W) + x


# ------------------------------------ main ------------------------------------ #
if __name__ == "__main__":
    key = jax.random.PRNGKey(0)
    kx, kp = jax.random.split(key)

    B, C, H, W = 2, 32, 8, 8            # GroupNorm(32) => C must be a multiple of 32
    n_heads, d_head, depth = 2, 16, 1   # inner_dim = 32

    x = jax.random.normal(kx, (B, C, H, W), jnp.float32)
    mod = SpatialTransformerPallas(C, n_heads, d_head, depth=depth,
                                   context_dim=None, key=kp)

    out = mod(x, context=None)          # self-attention path (context=None)
    out = jax.block_until_ready(out)
    assert out.shape == (B, C, H, W)

    ref = _reference(mod, x, context=None)
    assert jnp.allclose(out, ref, atol=1e-3, rtol=1e-3), (
        float(jnp.max(jnp.abs(out - ref))))

    print("KERNEL_OK")
</pallas_src>

<mosaic_0001>
module attributes {stable_mosaic.version = 11 : i64} {
  func.func @_groupnorm_kernel(%arg0: i32, %arg1: memref<1x32x64xf32, #tpu.memory_space<vmem>>, %arg2: memref<32x1xf32, #tpu.memory_space<vmem>>, %arg3: memref<32x1xf32, #tpu.memory_space<vmem>>, %arg4: memref<1x64x32xf32, #tpu.memory_space<vmem>>) attributes {dimension_semantics = [#tpu.dimension_semantics<parallel>], iteration_bounds = array<i64: 2>, scalar_prefetch = 0 : i64, scratch_operands = 0 : i64, tpu.core_type = #tpu.core_type<tc>, window_params = [{transform_indices = @transform_0, window_bounds = array<i64: 1, 32, 64>}, {pipeline_mode = #tpu.pipeline_mode<synchronous>, transform_indices = @transform_1, window_bounds = array<i64: 32, 1>}, {pipeline_mode = #tpu.pipeline_mode<synchronous>, transform_indices = @transform_2, window_bounds = array<i64: 32, 1>}, {transform_indices = @transform_3, window_bounds = array<i64: 1, 64, 32>}]} {
    %c0 = arith.constant 0 : index
    %c0_0 = arith.constant 0 : index
    %c0_1 = arith.constant 0 : index
    %0 = vector.load %arg1[%c0, %c0_0, %c0_1] : memref<1x32x64xf32, #tpu.memory_space<vmem>>, vector<1x32x64xf32>
    %1 = vector.shape_cast %0 : vector<1x32x64xf32> to vector<32x64xf32>
    %cst = arith.constant dense<0.000000e+00> : vector<32xf32>
    %2 = vector.multi_reduction <add>, %1, %cst [1] : vector<32x64xf32> to vector<32xf32>
    %3 = vector.shape_cast %2 : vector<32xf32> to vector<32x1xf32>
    %cst_2 = arith.constant 6.400000e+01 : f32
    %4 = vector.broadcast %cst_2 : f32 to vector<32x1xf32>
    %5 = arith.divf %3, %4 : vector<32x1xf32>
    %6 = vector.broadcast %5 : vector<32x1xf32> to vector<32x64xf32>
    %7 = arith.subf %1, %6 : vector<32x64xf32>
    %8 = arith.mulf %7, %7 : vector<32x64xf32>
    %cst_3 = arith.constant dense<0.000000e+00> : vector<32xf32>
    %9 = vector.multi_reduction <add>, %8, %cst_3 [1] : vector<32x64xf32> to vector<32xf32>
    %10 = vector.shape_cast %9 : vector<32xf32> to vector<32x1xf32>
    %cst_4 = arith.constant 6.400000e+01 : f32
    %11 = vector.broadcast %cst_4 : f32 to vector<32x1xf32>
    %12 = arith.divf %10, %11 : vector<32x1xf32>
    %cst_5 = arith.constant 9.99999997E-7 : f32
    %13 = vector.broadcast %cst_5 : f32 to vector<32x1xf32>
    %14 = arith.addf %12, %13 : vector<32x1xf32>
    %15 = math.rsqrt %14 : vector<32x1xf32>
    %16 = vector.broadcast %15 : vector<32x1xf32> to vector<32x64xf32>
    %17 = arith.mulf %7, %16 : vector<32x64xf32>
    %c0_6 = arith.constant 0 : index
    %c0_7 = arith.constant 0 : index
    %18 = vector.load %arg2[%c0_6, %c0_7] : memref<32x1xf32, #tpu.memory_space<vmem>>, vector<32x1xf32>
    %19 = vector.broadcast %18 : vector<32x1xf32> to vector<32x64xf32>
    %20 = arith.mulf %17, %19 : vector<32x64xf32>
    %c0_8 = arith.constant 0 : index
    %c0_9 = arith.constant 0 : index
    %21 = vector.load %arg3[%c0_8, %c0_9] : memref<32x1xf32, #tpu.memory_space<vmem>>, vector<32x1xf32>
    %22 = vector.broadcast %21 : vector<32x1xf32> to vector<32x64xf32>
    %23 = arith.addf %20, %22 : vector<32x64xf32>
    %24 = tpu.transpose %23, [1, 0] : vector<32x64xf32> -> vector<64x32xf32>
    %c0_10 = arith.constant 0 : index
    %c0_11 = arith.constant 0 : index
    %c0_12 = arith.constant 0 : index
    %25 = vector.load %arg4[%c0_10, %c0_11, %c0_12] : memref<1x64x32xf32, #tpu.memory_space<vmem>>, vector<1x64x32xf32>
    %26 = vector.shape_cast %25 : vector<1x64x32xf32> to vector<64x32xf32>
    %27 = vector.shape_cast %24 : vector<64x32xf32> to vector<1x64x32xf32>
    tpu.vector_store %arg4[%c0_10, %c0_11, %c0_12], %27 {strides = array<i32>} : memref<1x64x32xf32, #tpu.memory_space<vmem>>, vector<1x64x32xf32>,
    return
  }
  func.func @transform_0(%arg0: i32) -> (i32, i32, i32) {
    %c0_i32 = arith.constant 0 : i32
    %c0_i32_0 = arith.constant 0 : i32
    %c0_i32_1 = arith.constant 0 : i32
    return %arg0, %c0_i32, %c0_i32_0 : i32, i32, i32
  }
  func.func @transform_1(%arg0: i32) -> (i32, i32) {
    %c0_i32 = arith.constant 0 : i32
    %c0_i32_0 = arith.constant 0 : i32
    %c0_i32_1 = arith.constant 0 : i32
    return %c0_i32, %c0_i32_0 : i32, i32
  }
  func.func @transform_2(%arg0: i32) -> (i32, i32) {
    %c0_i32 = arith.constant 0 : i32
    %c0_i32_0 = arith.constant 0 : i32
    %c0_i32_1 = arith.constant 0 : i32
    return %c0_i32, %c0_i32_0 : i32, i32
  }
  func.func @transform_3(%arg0: i32) -> (i32, i32, i32) {
    %c0_i32 = arith.constant 0 : i32
    %c0_i32_0 = arith.constant 0 : i32
    %c0_i32_1 = arith.constant 0 : i32
    return %arg0, %c0_i32, %c0_i32_0 : i32, i32, i32
  }
}

</mosaic_0001>

<bundles_post_ra>
// kernel: tpu_custom_call.1
= control target key start
LH: loop header
LB: loop body
LE: loop exit
PB: predicated region body
PF: predicated region fallthrough
CT: control target
= control target key end

     0   :  { %s443_s12 = smov 0   ;;  %s504_s0 = inlined_call_operand.vmem [shape: f32[2,32,64], index: 0, kind: input, shape index: {}]   ;;  %s505_s1 = inlined_call_operand.vmem [shape: f32[32,1], index: 1, kind: input, shape index: {}]   ;;  %s506_s2 = inlined_call_operand.vmem [shape: f32[32,1], index: 2, kind: input, shape index: {}]   ;;  %s507_s3 = inlined_call_operand.vmem [shape: f32[2,64,32], index: 3, kind: output, shape index: {}]  }
   0x1 LB: > { %s381_s13 = sadd.s32 4294967295, %s420_s12   ;;  %p385_p0 = scmp.ge.s32.totalorder %s420_s12, 1  ;;  %s420_s12 = sphi %s443_s12, %s13_s12  }
   0x2   : > { %p137_p1 = scmp.lt.s32.totalorder %s420_s12, 3 }
   0x4   : > { %p138_p2 = pnand %p385_p0, %p137_p1 }
   0x5   : > { %p161_p3 = scmp.lt.s32.totalorder (!%p138_p2), %s381_s13, 1  ;;  %vm175_vm0 = vcmask (!%p138_p2), 523264   ;;  %v422_v8 = vmov (!%p138_p2), 0   ;;  %v230_v24 = vld [vmem:[%s505_s1 + $0x8] sm:$0xff] (!%p138_p2)  ;;  %v257_v25 = vld [vmem:[%s506_s2] sm:$0xff] (!%p138_p2)  ;;  %v231_v27 = vld [vmem:[%s505_s1 + $0x10] sm:$0xff] (!%p138_p2) }
   0x6   : > { %141 = sbr.rel (%p138_p2) target bundleno = 553 (0x229), region = 32  ;;  %405 = vset.pattern.permute.xlu1 (!%p138_p2), %v422_v8  ;;  %404 = vset.pattern.permute.xlu0 (!%p138_p2), %v422_v8  ;;  %v229_v26 = vld [vmem:[%s505_s1] sm:$0xff] (!%p138_p2)  ;;  %v258_v28 = vld [vmem:[%s506_s2 + $0x8] sm:$0xff] (!%p138_p2)  ;;  %v232_v29 = vld [vmem:[%s505_s1 + $0x18] sm:$0xff] (!%p138_p2)  ;;  %vm317_vm1 = vcmask (!%p138_p2), 261120  }
   0x7   : > { %v259_v30 = vld [vmem:[%s506_s2 + $0x10] sm:$0xff] (!%p138_p2)  ;;  %v260_v36 = vld [vmem:[%s506_s2 + $0x18] sm:$0xff] (!%p138_p2) }
   0xd   : > { %s509_s13 = smov (!%p161_p3, %s381_s13), 1 }
   0xe   : > { %s392_s14 = sshll.u32 %s509_s13, 5  ;;  %s393_s7 = sshll.u32 %s509_s13, 6 }
   0xf   : > { %s165_s17 = scalar_lea.vmem %s504_s0, %s392_s14  ;;  %s170_s10 = scalar_lea.vmem %s507_s3, %s393_s7 }
  0x10   : > { %v171_v0 = vld [vmem:[%s165_s17] sm:$0xff]  ;;  %v173_v1 = vld [vmem:[%s165_s17 + $0x10] sm:$0xff]  ;;  %v172_v2 = vld [vmem:[%s165_s17 + $0x8] sm:$0xff] }
  0x11   : > { %v176_v3 = vsel %vm175_vm0, %v171_v0, 0.0  ;;  %v182_v4 = vsel %vm175_vm0, %v173_v1, 0.0  ;;  %v174_v5 = vld [vmem:[%s165_s17 + $0x18] sm:$0xff]  ;;  %v179_v6 = vsel %vm175_vm0, %v172_v2, 0.0 }
  0x12   : > { %177 = vadd.xlane.f32.xlu0 %v176_v3  ;;  %183 = vadd.xlane.f32.xlu1 %v182_v4  ;;  %v185_v7 = vsel %vm175_vm0, %v174_v5, 0.0 }
  0x16   : > { %180 = vadd.xlane.f32.xlu0 %v179_v6  ;;  %186 = vadd.xlane.f32.xlu1 %v185_v7 }
  0x9f   : > { %v178_v9 = vpop.xlane.xlu0 %177  ;;  %v184_v10 = vpop.xlane.xlu1 %183 }
  0xa0   : > { %v189_v11 = vmul.f32 0.015625, %v178_v9  ;;  %v191_v12 = vmul.f32 0.015625, %v184_v10 }
  0xa2   : > { %v193_v13 = vsub.f32 %v171_v0, %v189_v11  ;;  %v195_v14 = vsub.f32 %v173_v1, %v191_v12 }
  0xa3   : > { %v181_v15 = vpop.xlane.xlu0 %180  ;;  %v187_v31 = vpop.xlane.xlu1 %186 }
  0xa4   : > { %v190_v16 = vmul.f32 0.015625, %v181_v15  ;;  %v197_v17 = vmul.f32 %v193_v13, %v193_v13  ;;  %v199_v18 = vmul.f32 %v195_v14, %v195_v14  ;;  %v192_v32 = vmul.f32 0.015625, %v187_v31 }
  0xa6   : > { %v194_v19 = vsub.f32 %v172_v2, %v190_v16  ;;  %v201_v20 = vsel %vm175_vm0, %v197_v17, 0.0  ;;  %v207_v21 = vsel %vm175_vm0, %v199_v18, 0.0  ;;  %v196_v33 = vsub.f32 %v174_v5, %v192_v32 }
  0xa7   : > { %202 = vadd.xlane.f32.xlu0 %v201_v20 }
  0xa8   : > { %v198_v22 = vmul.f32 %v194_v19, %v194_v19  ;;  %v200_v34 = vmul.f32 %v196_v33, %v196_v33 }
  0xaa   : > { %v204_v23 = vsel %vm175_vm0, %v198_v22, 0.0  ;;  %v210_v35 = vsel %vm175_vm0, %v200_v34, 0.0 }
  0xab   : > { %208 = vadd.xlane.f32.xlu0 %v207_v21  ;;  %205 = vadd.xlane.f32.xlu1 %v204_v23 }
  0xbc   : > { %240 = vperm.xlu1 %405, %v230_v24  }
  0xc0   : > { %263 = vperm.xlu1 %405, %v257_v25  }
  0xc1   : > { %235 = vperm.xlu0 %404, %v229_v26  }
  0xc4   : > { %245 = vperm.xlu1 %405, %v231_v27  }
  0xc8   : > { %268 = vperm.xlu1 %405, %v258_v28  }
  0xcc   : > { %250 = vperm.xlu1 %405, %v232_v29  }
  0xd0   : > { %273 = vperm.xlu1 %405, %v259_v30  }
  0xf4   : > { %211 = vadd.xlane.f32.xlu1 %v210_v35 }
 0x105   : > { %278 = vperm.xlu1 %405, %v260_v36  }
 0x134   : > { %v203_v37 = vpop.xlane.xlu0 %202 }
 0x135   : > { %v213_v38 = vmul.f32 0.015625, %v203_v37 }
 0x137   : > { %v217_v39 = vadd.f32 1e-06, %v213_v38 }
 0x138   : > { %v206_v40 = vpop.xlane.xlu1 %205  ;;  %v209_v41 = vpop.xlane.xlu0 %208 }
 0x139   : > { %406 = vrsqrt.f32 %v217_v39  ;;  %v214_v42 = vmul.f32 0.015625, %v206_v40  ;;  %v215_v43 = vmul.f32 0.015625, %v209_v41 }
 0x13b   : > { %v218_v44 = vadd.f32 1e-06, %v214_v42  ;;  %v219_v45 = vadd.f32 1e-06, %v215_v43 }
 0x13c   : > { %v241_v46 = vpop.permute.xlu1 %240 }
 0x13d   : > { %408 = vrsqrt.f32 %v218_v44 }
 0x13e   : > { %410 = vrsqrt.f32 %v219_v45 }
 0x140   : > { %v264_v47 = vpop.permute.xlu1 %263  ;;  %v236_v49 = vpop.permute.xlu0 %235 }
 0x143   : > { %v407_v48 = vpop.eup %406 }
 0x144   : > { %v246_v50 = vpop.permute.xlu1 %245  ;;  %v225_v51 = vmul.f32 %v407_v48, %v193_v13 }
 0x146   : > { %v253_v52 = vmul.f32 %v236_v49, %v225_v51 }
 0x147   : > { %v409_v53 = vpop.eup %408 }
 0x148   : > { %v411_v54 = vpop.eup %410  ;;  %v226_v55 = vmul.f32 %v409_v53, %v194_v19  ;;  %v281_v56 = vadd.f32 %v264_v47, %v253_v52  ;;  %v269_v57 = vpop.permute.xlu1 %268 }
 0x149   : > { %v227_v59 = vmul.f32 %v411_v54, %v195_v14 }
 0x14a   : > { %v254_v58 = vmul.f32 %v241_v46, %v226_v55  ;;  %285 = vxpose.xlu1.b32.start [1/4] (short) (narrow) %v281_v56, 64 }
 0x14b   : > { %v255_v62 = vmul.f32 %v246_v50, %v227_v59 }
 0x14c   : > { %v282_v60 = vadd.f32 %v269_v57, %v254_v58  ;;  %v251_v61 = vpop.permute.xlu1 %250 }
 0x14e   : > { %286 = vxpose.xlu1.b32.cont [2/4] (short) (narrow) %v282_v60, 64 }
 0x150   : > { %v274_v63 = vpop.permute.xlu1 %273 }
 0x151   : > { %v283_v0 = vadd.f32 %v274_v63, %v255_v62 }
 0x153   : > { %287 = vxpose.xlu1.b32.cont [3/4] (short) (narrow) %v283_v0, 64 }
 0x181   : > { %v212_v1 = vpop.xlane.xlu1 %211 }
 0x182   : > { %v216_v2 = vmul.f32 0.015625, %v212_v1 }
 0x184   : > { %v220_v3 = vadd.f32 1e-06, %v216_v2 }
 0x185   : > { %v279_v7 = vpop.permute.xlu1 %278 }
 0x186   : > { %412 = vrsqrt.f32 %v220_v3 }
 0x190   : > { %v413_v4 = vpop.eup %412 }
 0x191   : > { %v228_v5 = vmul.f32 %v413_v4, %v196_v33 }
 0x193   : > { %v256_v6 = vmul.f32 %v251_v61, %v228_v5 }
 0x195   : > { %v284_v8 = vadd.f32 %v279_v7, %v256_v6 }
 0x197   : > { %288 = vxpose.xlu1.b32.end [4/4] (short) (narrow) %v284_v8, 64 }
 0x20b   : > { %v301_v9 = vpop.trf.xlu1 }
 0x20c   : > { %318 = vst.msk [vmem:[%s170_s10] sm:$0xff] %vm317_vm1, %v301_v9 }
 0x20f   : > { %v302_v10 = vpop.trf.xlu1 }
 0x210   : > { %319 = vst.msk [vmem:[%s170_s10 + $0x8] sm:$0xff] %vm317_vm1, %v302_v10 }
 0x213   : > { %v303_v11 = vpop.trf.xlu1 }
 0x214   : > { %320 = vst.msk [vmem:[%s170_s10 + $0x10] sm:$0xff] %vm317_vm1, %v303_v11 }
 0x217   : > { %v304_v12 = vpop.trf.xlu1 }
 0x218   : > { %321 = vst.msk [vmem:[%s170_s10 + $0x18] sm:$0xff] %vm317_vm1, %v304_v12 }
 0x21b   : > { %v305_v13 = vpop.trf.xlu1 }
 0x21c   : > { %322 = vst.msk [vmem:[%s170_s10 + $0x20] sm:$0xff] %vm317_vm1, %v305_v13 }
 0x21f   : > { %v306_v14 = vpop.trf.xlu1 }
 0x220   : > { %323 = vst.msk [vmem:[%s170_s10 + $0x28] sm:$0xff] %vm317_vm1, %v306_v14 }
 0x223   : > { %v307_v15 = vpop.trf.xlu1 }
 0x224   : > { %324 = vst.msk [vmem:[%s170_s10 + $0x30] sm:$0xff] %vm317_vm1, %v307_v15 }
 0x227   : > { %v308_v16 = vpop.trf.xlu1 }
 0x228   : > { %325 = vst.msk [vmem:[%s170_s10 + $0x38] sm:$0xff] %vm317_vm1, %v308_v16 }
 0x229 PF: > { %s13_s12 = sadd.s32 1, %s420_s12  }
 0x22a   : > { %p10_p4 = scmp.ge.s32.totalorder %s13_s12, 4  }
 0x22c   :  { %12 = sbr.rel (!%p10_p4) target bundleno = 1 (0x1), region = 62 }

</bundles_post_ra>
